<compile_context>
chip_gen: v6e
topology: v6e:2x2x1
jax: 0.10.0
libtpu: 0.0.40
codegen_flags: <defaults>
</compile_context>

<pallas_src>
import functools

import jax
import jax.numpy as jnp
from jax.experimental import pallas as pl
from jax.experimental.pallas import tpu as pltpu

SEG_SIZES = (20, 6, 21, 20, 6, 21, 20, 6, 21, 20, 6, 21)
FEAT_DIM = sum(SEG_SIZES)   # 188
NUM_SEG = len(SEG_SIZES)    # 12
HID = 3


def senet_kernel(x_ref, fused1_ref, b1_ref, w2t_ref, b2_ref, expand_ref, o_ref):
    x = x_ref[...].astype(jnp.float32)                                   # [TB, 188]

    # fused (segment-mean + fc1) -> relu            fused1 = mean_m @ fc1.weight.T  (188, 3)
    h = jnp.dot(x, fused1_ref[...], preferred_element_type=jnp.float32) + b1_ref[...]  # [TB, 3]
    h = jnp.maximum(h, 0.0)

    # fc2 -> sigmoid
    w = jnp.dot(h, w2t_ref[...], preferred_element_type=jnp.float32) + b2_ref[...]     # [TB, 12]
    w = jax.nn.sigmoid(w)

    # broadcast each of the 12 weights over its segment via (12, 188) one-hot expand matrix
    scale = jnp.dot(w, expand_ref[...], preferred_element_type=jnp.float32)            # [TB, 188]

    # dropout (eval mode) == identity
    o_ref[...] = (x * scale).astype(o_ref.dtype)


def make_segment_matrices(dtype=jnp.float32):
    """Build the (188,12) mean matrix and (12,188) expand matrix (plain JAX glue)."""
    mean_m = jnp.zeros((FEAT_DIM, NUM_SEG), dtype=dtype)
    expand_m = jnp.zeros((NUM_SEG, FEAT_DIM), dtype=dtype)
    off = 0
    for s, sz in enumerate(SEG_SIZES):
        mean_m = mean_m.at[off:off + sz, s].set(1.0 / sz)
        expand_m = expand_m.at[s, off:off + sz].set(1.0)
        off += sz
    return mean_m, expand_m


def init_params(key):
    """Deterministic PyTorch-Linear-style init for fc1 (12->3) and fc2 (3->12)."""
    k1, k2, k3, k4 = jax.random.split(key, 4)
    bound1 = 1.0 / jnp.sqrt(12.0)
    bound2 = 1.0 / jnp.sqrt(3.0)
    # stored already transposed: y = x @ Wt + b
    w1t = jax.random.uniform(k1, (12, HID), jnp.float32, -bound1, bound1)        # fc1.weight.T
    b1 = jax.random.uniform(k2, (1, HID), jnp.float32, -bound1, bound1)          # fc1.bias
    w2t = jax.random.uniform(k3, (HID, NUM_SEG), jnp.float32, -bound2, bound2)   # fc2.weight.T
    b2 = jax.random.uniform(k4, (1, NUM_SEG), jnp.float32, -bound2, bound2)      # fc2.bias
    return w1t, b1, w2t, b2


@functools.partial(jax.jit, static_argnames=("tb",))
def senet_forward(x, w1t, b1, w2t, b2, mean_m, expand_m, *, tb=4096):
    """Batch-tiled Pallas forward. x: [B, 188]; output has same shape/dtype as x."""
    B = x.shape[0]

    # Exact fusion of the segment-mean matmul into fc1 (tiny 188x12 @ 12x3 on host/XLA side).
    fused1 = jnp.dot(mean_m.astype(jnp.float32), w1t.astype(jnp.float32))   # (188, 3)

    # Batch tile: clamp to B; interior tiles must be a multiple of 8 (sublane constraint).
    tb_eff = min(tb, B)
    if tb_eff < B:
        tb_eff = max(8, (tb_eff // 8) * 8)
    grid = (pl.cdiv(B, tb_eff),)

    def const_spec(arr):
        # Small parameter arrays: full block, constant index_map -> stay resident in VMEM.
        return pl.BlockSpec(arr.shape, lambda i: (0, 0))

    x_spec = pl.BlockSpec((tb_eff, FEAT_DIM), lambda i: (i, 0))

    return pl.pallas_call(
        senet_kernel,
        out_shape=jax.ShapeDtypeStruct((B, FEAT_DIM), x.dtype),
        grid=grid,
        in_specs=[
            x_spec,
            const_spec(fused1),
            const_spec(b1),
            const_spec(w2t),
            const_spec(b2),
            const_spec(expand_m),
        ],
        out_specs=x_spec,
        compiler_params=pltpu.CompilerParams(dimension_semantics=("parallel",)),
    )(x, fused1, b1, w2t, b2, expand_m)


def senet_reference(x, w1t, b1, w2t, b2):
    """Pure-JAX reference mirroring the PyTorch forward (eval mode)."""
    x = x.astype(jnp.float32)
    segs = []
    off = 0
    for sz in SEG_SIZES:
        segs.append(x[:, off:off + sz])
        off += sz
    se = jnp.stack([jnp.mean(s, axis=1) for s in segs], axis=1)      # [B, 12]
    h = jnp.maximum(se @ w1t + b1, 0.0)
    w = jax.nn.sigmoid(h @ w2t + b2)
    outs = [w[:, i:i + 1] * segs[i] for i in range(NUM_SEG)]
    return jnp.concatenate(outs, axis=1)


if __name__ == "__main__":
    key = jax.random.PRNGKey(0)
    kx, kp = jax.random.split(key)

    w1t, b1, w2t, b2 = init_params(kp)
    mean_m, expand_m = make_segment_matrices()

    # 1) Small f32 batch: single tile path.
    B = 8
    x = jax.random.normal(kx, (B, FEAT_DIM), jnp.float32)
    out = jax.block_until_ready(senet_forward(x, w1t, b1, w2t, b2, mean_m, expand_m))
    ref = senet_reference(x, w1t, b1, w2t, b2)
    assert out.shape == (B, FEAT_DIM)
    assert jnp.allclose(out, ref, atol=1e-5, rtol=1e-5), "f32 mismatch vs reference"

    # 2) Ragged last-tile path: B not a multiple of the batch tile.
    B2 = 13
    x2 = jax.random.normal(jax.random.PRNGKey(1), (B2, FEAT_DIM), jnp.float32)
    out2 = jax.block_until_ready(senet_forward(x2, w1t, b1, w2t, b2, mean_m, expand_m, tb=8))
    ref2 = senet_reference(x2, w1t, b1, w2t, b2)
    assert out2.shape == (B2, FEAT_DIM)
    assert jnp.allclose(out2, ref2, atol=1e-5, rtol=1e-5), "ragged-tile mismatch vs reference"

    # 3) bf16 I/O path (halves HBM bytes; internal math stays f32).
    x_bf16 = x.astype(jnp.bfloat16)
    out_bf16 = jax.block_until_ready(
        senet_forward(x_bf16, w1t, b1, w2t, b2, mean_m, expand_m))
    ref_bf16 = senet_reference(x_bf16.astype(jnp.float32), w1t, b1, w2t, b2)
    assert out_bf16.dtype == jnp.bfloat16
    assert jnp.allclose(out_bf16.astype(jnp.float32), ref_bf16, atol=5e-2, rtol=5e-2), \
        "bf16 mismatch vs reference"

    print("KERNEL_OK")
</pallas_src>

<mosaic_0001>
module attributes {stable_mosaic.version = 11 : i64} {
  func.func @senet_kernel(%arg0: i32, %arg1: memref<8x188xf32, #tpu.memory_space<vmem>>, %arg2: memref<188x3xf32, #tpu.memory_space<vmem>>, %arg3: memref<1x3xf32, #tpu.memory_space<vmem>>, %arg4: memref<3x12xf32, #tpu.memory_space<vmem>>, %arg5: memref<1x12xf32, #tpu.memory_space<vmem>>, %arg6: memref<12x188xf32, #tpu.memory_space<vmem>>, %arg7: memref<8x188xf32, #tpu.memory_space<vmem>>) attributes {dimension_semantics = [#tpu.dimension_semantics<parallel>], iteration_bounds = array<i64: 1>, scalar_prefetch = 0 : i64, scratch_operands = 0 : i64, tpu.core_type = #tpu.core_type<tc>, window_params = [{transform_indices = @transform_0, window_bounds = array<i64: 8, 188>}, {pipeline_mode = #tpu.pipeline_mode<synchronous>, transform_indices = @transform_1, window_bounds = array<i64: 188, 3>}, {pipeline_mode = #tpu.pipeline_mode<synchronous>, transform_indices = @transform_2, window_bounds = array<i64: 1, 3>}, {pipeline_mode = #tpu.pipeline_mode<synchronous>, transform_indices = @transform_3, window_bounds = array<i64: 3, 12>}, {pipeline_mode = #tpu.pipeline_mode<synchronous>, transform_indices = @transform_4, window_bounds = array<i64: 1, 12>}, {pipeline_mode = #tpu.pipeline_mode<synchronous>, transform_indices = @transform_5, window_bounds = array<i64: 12, 188>}, {transform_indices = @transform_6, window_bounds = array<i64: 8, 188>}]} {
    %c0 = arith.constant 0 : index
    %c0_0 = arith.constant 0 : index
    %0 = vector.load %arg1[%c0, %c0_0] : memref<8x188xf32, #tpu.memory_space<vmem>>, vector<8x188xf32>
    %c0_1 = arith.constant 0 : index
    %c0_2 = arith.constant 0 : index
    %1 = vector.load %arg2[%c0_1, %c0_2] : memref<188x3xf32, #tpu.memory_space<vmem>>, vector<188x3xf32>
    %cst = arith.constant dense<0.000000e+00> : vector<8x3xf32>
    %2 = tpu.matmul %0, %1, %cst {dimension_numbers = #tpu.dot_dimension_numbers<[1], [0], [0], [1], [0, 0, 1, 1], [], []>} : vector<8x188xf32>, vector<188x3xf32>, vector<8x3xf32> -> vector<8x3xf32>
    %c0_3 = arith.constant 0 : index
    %c0_4 = arith.constant 0 : index
    %3 = vector.load %arg3[%c0_3, %c0_4] : memref<1x3xf32, #tpu.memory_space<vmem>>, vector<1x3xf32>
    %4 = vector.broadcast %3 : vector<1x3xf32> to vector<8x3xf32>
    %5 = arith.addf %2, %4 : vector<8x3xf32>
    %cst_5 = arith.constant 0.000000e+00 : f32
    %6 = vector.broadcast %cst_5 : f32 to vector<8x3xf32>
    %7 = arith.maximumf %5, %6 : vector<8x3xf32>
    %c0_6 = arith.constant 0 : index
    %c0_7 = arith.constant 0 : index
    %8 = vector.load %arg4[%c0_6, %c0_7] : memref<3x12xf32, #tpu.memory_space<vmem>>, vector<3x12xf32>
    %cst_8 = arith.constant dense<0.000000e+00> : vector<8x12xf32>
    %9 = tpu.matmul %7, %8, %cst_8 {dimension_numbers = #tpu.dot_dimension_numbers<[1], [0], [0], [1], [0, 0, 1, 1], [], []>} : vector<8x3xf32>, vector<3x12xf32>, vector<8x12xf32> -> vector<8x12xf32>
    %c0_9 = arith.constant 0 : index
    %c0_10 = arith.constant 0 : index
    %10 = vector.load %arg5[%c0_9, %c0_10] : memref<1x12xf32, #tpu.memory_space<vmem>>, vector<1x12xf32>
    %11 = vector.broadcast %10 : vector<1x12xf32> to vector<8x12xf32>
    %12 = arith.addf %9, %11 : vector<8x12xf32>
    %13 = arith.negf %12 : vector<8x12xf32>
    %14 = math.exp %13 : vector<8x12xf32>
    %cst_11 = arith.constant 1.000000e+00 : f32
    %15 = vector.broadcast %cst_11 : f32 to vector<8x12xf32>
    %16 = arith.addf %15, %14 : vector<8x12xf32>
    %17 = arith.divf %15, %16 : vector<8x12xf32>
    %c0_12 = arith.constant 0 : index
    %c0_13 = arith.constant 0 : index
    %18 = vector.load %arg6[%c0_12, %c0_13] : memref<12x188xf32, #tpu.memory_space<vmem>>, vector<12x188xf32>
    %cst_14 = arith.constant dense<0.000000e+00> : vector<8x188xf32>
    %19 = tpu.matmul %17, %18, %cst_14 {dimension_numbers = #tpu.dot_dimension_numbers<[1], [0], [0], [1], [0, 0, 1, 1], [], []>} : vector<8x12xf32>, vector<12x188xf32>, vector<8x188xf32> -> vector<8x188xf32>
    %20 = arith.mulf %0, %19 : vector<8x188xf32>
    %c0_15 = arith.constant 0 : index
    %c0_16 = arith.constant 0 : index
    %21 = vector.load %arg7[%c0_15, %c0_16] : memref<8x188xf32, #tpu.memory_space<vmem>>, vector<8x188xf32>
    tpu.vector_store %arg7[%c0_15, %c0_16], %20 {strides = array<i32>} : memref<8x188xf32, #tpu.memory_space<vmem>>, vector<8x188xf32>,
    return
  }
  func.func @transform_0(%arg0: i32) -> (i32, i32) {
    %c0_i32 = arith.constant 0 : i32
    %c0_i32_0 = arith.constant 0 : i32
    return %arg0, %c0_i32 : i32, i32
  }
  func.func @transform_1(%arg0: i32) -> (i32, i32) {
    %c0_i32 = arith.constant 0 : i32
    %c0_i32_0 = arith.constant 0 : i32
    %c0_i32_1 = arith.constant 0 : i32
    return %c0_i32, %c0_i32_0 : i32, i32
  }
  func.func @transform_2(%arg0: i32) -> (i32, i32) {
    %c0_i32 = arith.constant 0 : i32
    %c0_i32_0 = arith.constant 0 : i32
    %c0_i32_1 = arith.constant 0 : i32
    return %c0_i32, %c0_i32_0 : i32, i32
  }
  func.func @transform_3(%arg0: i32) -> (i32, i32) {
    %c0_i32 = arith.constant 0 : i32
    %c0_i32_0 = arith.constant 0 : i32
    %c0_i32_1 = arith.constant 0 : i32
    return %c0_i32, %c0_i32_0 : i32, i32
  }
  func.func @transform_4(%arg0: i32) -> (i32, i32) {
    %c0_i32 = arith.constant 0 : i32
    %c0_i32_0 = arith.constant 0 : i32
    %c0_i32_1 = arith.constant 0 : i32
    return %c0_i32, %c0_i32_0 : i32, i32
  }
  func.func @transform_5(%arg0: i32) -> (i32, i32) {
    %c0_i32 = arith.constant 0 : i32
    %c0_i32_0 = arith.constant 0 : i32
    %c0_i32_1 = arith.constant 0 : i32
    return %c0_i32, %c0_i32_0 : i32, i32
  }
  func.func @transform_6(%arg0: i32) -> (i32, i32) {
    %c0_i32 = arith.constant 0 : i32
    %c0_i32_0 = arith.constant 0 : i32
    return %arg0, %c0_i32 : i32, i32
  }
}

</mosaic_0001>

<bundles_post_ra>
// kernel: senet_forward.1
= control target key start
LH: loop header
LB: loop body
LE: loop exit
PB: predicated region body
PF: predicated region fallthrough
CT: control target
= control target key end

     0   :  { %v377_v1 = vmov 0.0   ;;  %vm57_vm0 = vcmask 490496   ;;  %s553_s0 = inlined_call_operand.vmem [shape: f32[8,188], index: 0, kind: input, shape index: {}]   ;;  %s554_s1 = inlined_call_operand.vmem [shape: f32[188,3], index: 1, kind: input, shape index: {}]   ;;  %s555_s2 = inlined_call_operand.vmem [shape: f32[1,3], index: 2, kind: input, shape index: {}]   ;;  %s556_s3 = inlined_call_operand.vmem [shape: f32[3,12], index: 3, kind: input, shape index: {}]   ;;  %s557_s4 = inlined_call_operand.vmem [shape: f32[1,12], index: 4, kind: input, shape index: {}]   ;;  %s558_s5 = inlined_call_operand.vmem [shape: f32[12,188], index: 5, kind: input, shape index: {}]   ;;  %s559_s6 = inlined_call_operand.hbm [shape: f32[8,188], index: 6, kind: output, shape index: {}]  }
   0x1   :  { %v41_v0 = vld [vmem:[%s554_s1 + $0x78] sm:$0xff]  ;;  %65 = vmatprep.subr.mxu0 %v377_v1  ;;  %v40_v2 = vld [vmem:[%s554_s1 + $0x70] sm:$0xff]  ;;  %343 = vmatprep.subr.mxu1 %v377_v1  ;;  %v39_v3 = vld [vmem:[%s554_s1 + $0x68] sm:$0xff] }
   0x2   :  { %66 = vmatpush1.msra.mxu0 %v41_v0  ;;  %v38_v4 = vld [vmem:[%s554_s1 + $0x60] sm:$0xff]  ;;  %v37_v5 = vld [vmem:[%s554_s1 + $0x58] sm:$0xff]  ;;  %v438_v6 = vld [vmem:[%s553_s0 + $0x8] sm:$0xff] }
   0x3   :  { %67 = vmatprep.subr.mxu0 %v377_v1  ;;  %v36_v7 = vld [vmem:[%s554_s1 + $0x50] sm:$0xff]  ;;  %333 = vmatprep.mubr.msk.f32.mxu0 %vm57_vm0, %v438_v6 }
   0x4   :  { %68 = vmatpush1.msra.mxu0 %v40_v2 }
   0x5   :  { %69 = vmatprep.subr.mxu0 %v377_v1 }
   0x6   :  { %70 = vmatpush1.msra.mxu0 %v39_v3 }
   0x7   :  { %71 = vmatprep.subr.mxu0 %v377_v1 }
   0x8   :  { %72 = vmatpush1.msra.mxu0 %v38_v4 }
   0x9   :  { %73 = vmatprep.subr.mxu0 %v377_v1 }
   0xa   :  { %11 = vsyncpa [#allocation3], 0  ;;  %74 = vmatpush1.msra.mxu0 %v37_v5  ;;  %v35_v8 = vld [vmem:[%s554_s1 + $0x48] sm:$0xff]  ;;  %v34_v9 = vld [vmem:[%s554_s1 + $0x40] sm:$0xff]  ;;  %vm61_vm1 = vcmask 1043456   ;;  %vm148_vm2 = vcmask 1042432  }
   0xb   :  { %75 = vmatprep.subr.mxu0 %v377_v1  ;;  %v33_v10 = vld [vmem:[%s554_s1 + $0x38] sm:$0xff]  ;;  %v32_v11 = vld [vmem:[%s554_s1 + $0x30] sm:$0xff]  ;;  %v31_v12 = vld [vmem:[%s554_s1 + $0x28] sm:$0xff]  ;;  %vm378_vm3 = vmmov 0   ;;  %vm144_vm4 = vcmask 23552   ;;  %vm232_vm5 = vcmask 97280  }
   0xc   :  { %76 = vmatpush1.msra.mxu0 %v36_v7  ;;  %v30_v13 = vld [vmem:[%s554_s1 + $0x20] sm:$0xff]  ;;  %v29_v14 = vld [vmem:[%s554_s1 + $0x18] sm:$0xff]  ;;  %v28_v15 = vld [vmem:[%s554_s1 + $0x10] sm:$0xff]  ;;  %345 = vmatprep.mubr.msk.f32.mxu1 %vm378_vm3, %v377_v1 }
   0xd   :  { %77 = vmatprep.subr.mxu0 %v377_v1  ;;  %v27_v16 = vld [vmem:[%s554_s1 + $0x8] sm:$0xff]  ;;  %v26_v17 = vld [vmem:[%s554_s1] sm:$0xff]  ;;  %v49_v18 = vld [vmem:[%s554_s1 + $0xb8] sm:$0xf] }
   0xe   :  { %78 = vmatpush1.msra.mxu0 %v35_v8  ;;  %v48_v19 = vld [vmem:[%s554_s1 + $0xb0] sm:$0xff]  ;;  %v47_v20 = vld [vmem:[%s554_s1 + $0xa8] sm:$0xff]  ;;  %v46_v21 = vld [vmem:[%s554_s1 + $0xa0] sm:$0xff] }
   0xf   :  { %79 = vmatprep.subr.mxu0 %v377_v1  ;;  %v45_v22 = vld [vmem:[%s554_s1 + $0x98] sm:$0xff]  ;;  %v44_v23 = vld [vmem:[%s554_s1 + $0x90] sm:$0xff]  ;;  %v43_v24 = vld [vmem:[%s554_s1 + $0x88] sm:$0xff] }
  0x10   :  { %80 = vmatpush1.msra.mxu0 %v34_v9  ;;  %v42_v25 = vld [vmem:[%s554_s1 + $0x80] sm:$0xff]  ;;  %v231_v33 = vld [vmem:[%s558_s5 + $0x18] sm:$0xf]  ;;  %v230_v34 = vld [vmem:[%s558_s5 + $0x10] sm:$0xf] }
  0x11   :  { %81 = vmatprep.subr.mxu0 %v377_v1  ;;  %v24_v26 = vld [vmem:[%s553_s0] sm:$0xff]  ;;  %v229_v35 = vld [vmem:[%s558_s5 + $0x8] sm:$0xff] }
  0x12   :  { %82 = vmatpush1.msra.mxu0 %v33_v10  ;;  %v136_v27 = vld [vmem:[%s556_s3] sm:$0x7] }
  0x13   :  { %83 = vmatprep.subr.mxu0 %v377_v1  ;;  %344 = vmatpush3.msk.msra.mxu1 %vm148_vm2, %v136_v27  ;;  %v331_v28 = vld [vmem:[%s555_s2] ss:$0 sm:$0xff] }
  0x14   :  { %84 = vmatpush1.msra.mxu0 %v32_v11  ;;  %338 = vmatprep.subr.msk.mxu1 %vm61_vm1, %v231_v33  ;;  %v228_v36 = vld [vmem:[%s558_s5] sm:$0xff]  ;;  %s379_s5 = smov [#allocation2]  }
  0x15   :  { %85 = vmatprep.subr.mxu0 %v377_v1  ;;  %v334_v37 = vld [vmem:[%s557_s4] ss:$0 sm:$0xff]  ;;  %s323_s11 = sshll.u32 %s379_s5, 4  ;;  %s324_s11 = int_to_ptr.vmem [resolvable:$true] %s323_s11 }
  0x16   :  { %86 = vmatpush1.msra.mxu0 %v31_v12  ;;  %s355_s4 = scalar_lea.vmem %s324_s11, 256  ;;  %p360_p1 = scmp.lt.s32.totalorder %s324_s11, %s324_s11 }
  0x17   :  { %87 = vmatprep.subr.mxu0 %v377_v1  ;;  %p356_p0 = scmp.ne.s32.totalorder %s324_s11, %s355_s4  ;;  %p361_p2 = scmp.lt.s32.totalorder %s355_s4, %s355_s4 }
  0x18   :  { %88 = vmatpush1.msra.mxu0 %v30_v13 }
  0x19   :  { %89 = vmatprep.subr.mxu0 %v377_v1  ;;  %p362_p3 = por %p361_p2, %p360_p1 }
  0x1a   :  { %90 = vmatpush1.msra.mxu0 %v29_v14 }
  0x1b   :  { %91 = vmatprep.subr.mxu0 %v377_v1  ;;  %p363_p4 = pnand %p362_p3, %p356_p0 }
  0x1c   :  { %92 = vmatpush1.msra.mxu0 %v28_v15 }
  0x1d   :  { %93 = vmatprep.subr.mxu0 %v377_v1 }
  0x1e   :  { %94 = vmatpush1.msra.mxu0 %v27_v16 }
  0x1f   :  { %95 = vmatprep.subr.mxu0 %v377_v1 }
  0x20   :  { %96 = vmatpush1.msra.mxu0 %v26_v17 }
  0x21   :  { %113 = vmatprep.subr.mxu0 %v377_v1 }
  0x22   :  { %332 = vmatpush2.msk.msra.mxu0 %vm61_vm1, %v49_v18 }
  0x23   :  { %115 = vmatprep.subr.mxu0 %v377_v1 }
  0x24   :  { %116 = vmatpush2.msra.mxu0 %v48_v19 }
  0x25   :  { %117 = vmatprep.subr.mxu0 %v377_v1 }
  0x26   :  { %118 = vmatpush2.msra.mxu0 %v47_v20 }
  0x27   :  { %119 = vmatprep.subr.mxu0 %v377_v1 }
  0x28   :  { %120 = vmatpush2.msra.mxu0 %v46_v21 }
  0x29   :  { %121 = vmatprep.subr.mxu0 %v377_v1 }
  0x2a   :  { %122 = vmatpush2.msra.mxu0 %v45_v22 }
  0x2b   :  { %123 = vmatprep.subr.mxu0 %v377_v1 }
  0x2c   :  { %124 = vmatpush2.msra.mxu0 %v44_v23 }
  0x2d   :  { %125 = vmatprep.subr.mxu0 %v377_v1 }
  0x2e   :  { %126 = vmatpush2.msra.mxu0 %v43_v24 }
  0x2f   :  { %127 = vmatprep.subr.mxu0 %v377_v1 }
  0x30   :  { %128 = vmatpush2.msra.mxu0 %v42_v25 }
  0x31   :  { %130 = vmatmul.mubr.f32.vlgmr.msra.gmra.mxu0 %v24_v26 }
  0xf1   :  { %v131_v29 = vpop.f32.mrf.mxu0 }
  0xf2   :  { %v132_v30 = vadd.f32 %v331_v28, %v131_v29 }
  0xf3   :  { %v133_v31 = vpop.f32.mrf.mxu0 }
  0xf4   :  { %v135_v32 = vmax.f32 %v132_v30, 0.0 }
  0xf6   :  { %346 = vmatmul.mubr.msk.f32.vlgmr.msra.gmra.mxu1 %vm144_vm4, %v135_v32 }
  0xf7   :  { %306 = vmatprep.mubr.f32.mxu1 %v377_v1  ;;  %339 = vmatpush1.msk.msra.mxu1 %vm61_vm1, %v230_v34 }
  0xf8   :  { %272 = vmatprep.subr.mxu1 %v229_v35 }
  0xf9   :  { %273 = vmatpush1.msra.mxu1 %v228_v36 }
 0x1b6   :  { %v218_v38 = vpop.f32.mrf.mxu1 }
 0x1b7   :  { %v219_v39 = vadd.f32 %v334_v37, %v218_v38 }
 0x1b8   :  { %v347_v40 = vpop.f32.mrf.mxu1 }
 0x1b9   :  { %v337_v41 = vmul.f32 -1.442695, %v219_v39 }
 0x1bb   :  { %351 = vpow2.f32 %v337_v41 }
 0x1c8   :  { %v352_v42 = vpop.eup %351 }
 0x1c9   :  { %v225_v43 = vadd.f32 1.0, %v352_v42 }
 0x1cb   :  { %353 = vrcp.f32 %v225_v43 }
 0x1d8   :  { %v354_v44 = vpop.eup %353 }
 0x1d9   :  { %340 = vmatmul.mubr.msk.f32.vlgmr.msra.gmra.mxu1 %vm232_vm5, %v354_v44 }
 0x299   :  { %v308_v45 = vpop.f32.mrf.mxu1 }
 0x29a   :  { %v313_v46 = vmul.f32 %v308_v45, %v24_v26 }
 0x29b   :  { %v310_v47 = vpop.f32.mrf.mxu1 }
 0x29c   :  { %315 = vst [vmem:[#allocation2] sm:$0xff] %v313_v46  ;;  %v314_v48 = vmul.f32 %v310_v47, %v438_v6 }
 0x29e   :  { %316 = vst.msk [vmem:[#allocation2 + $0x8] sm:$0xff] %vm57_vm0, %v314_v48 }
 0x29f   :  { %366 = shalt.err (!%p363_p4)
}
 0x2a0   :  { %326 = dma.vmem_to_hbm [thread:$0]  %s324_s11, 256, %s559_s6, [#allocation3]  }
 0x2a1   :  { %375 = dma.done.wait [#allocation3], 256  }
 0x2a2   :  { %376 = vsyncadd [#allocation3], 4294967040 }
 0x2a3   :  { %330 = vsyncpa [#allocation3], 1 }

</bundles_post_ra>
